<compile_context>
chip_gen: v7x
topology: tpu7x:2x2x1
jax: 0.10.0
libtpu: 0.0.40
codegen_flags: <defaults>
</compile_context>

<pallas_src>
import functools

import jax
import jax.numpy as jnp
from jax.experimental import pallas as pl
from jax.experimental.pallas import tpu as pltpu


# ----------------------------- Pallas kernels ------------------------------ #

def _lateral_kernel(x_ref, w_ref, b_ref, o_ref, *, cdt):
    # 1x1 conv == per-pixel channel matmul:  (TM, Cin) @ (Cin, Cout) + bias
    y = jnp.dot(x_ref[...].astype(cdt), w_ref[...],
                preferred_element_type=jnp.float32)
    o_ref[...] = (y + b_ref[...]).astype(o_ref.dtype)


def _deconv_lateral_kernel(cur_ref, x_ref, wd_ref, wl_ref, b_ref, o_ref, *, cdt):
    # One grid step = tr coarse rows; BOTH output-row parities (kh) handled here.
    #   deconv  : (TM, C)   @ (C, 2C)   -> (TM, 2C)   cols = (kw, c)
    #   lateral : (TM, Cin) @ (Cin, C)  twice, on the lane-aligned kw halves of
    #             the fine block, added into the matching lane halves.
    # out block (tr, 2, W, 2C) is the free-reshape view of (N, 2H, 2W, C).
    tr, _, w, c2 = o_ref.shape
    cin = wl_ref.shape[0]
    tm = tr * w

    cur = cur_ref[...].reshape(tm, cur_ref.shape[-1]).astype(cdt)
    x_all = x_ref[...].astype(cdt)                      # (tr, 2, W, 2*Cin)
    wl = wl_ref[...]
    b = b_ref[...]

    halves = []
    for kh in range(2):                                 # static -> fully unrolled
        yd = jnp.dot(cur, wd_ref[kh], preferred_element_type=jnp.float32)   # (TM, 2C)
        xk = x_all[:, kh].reshape(tm, 2 * cin)          # fine pixels, cols = (kw, ci)
        y0 = jnp.dot(xk[:, :cin], wl, preferred_element_type=jnp.float32)   # kw = 0
        y1 = jnp.dot(xk[:, cin:], wl, preferred_element_type=jnp.float32)   # kw = 1
        y = yd + jnp.concatenate([y0, y1], axis=-1) + b
        halves.append(y.reshape(tr, 1, w, c2))
    # Single lane-dense store of the whole (tr, 2, W, 2C) block.
    o_ref[...] = jnp.concatenate(halves, axis=1).astype(o_ref.dtype)


# ------------------------------- helpers ------------------------------------ #

def _largest_divisor(n, cap, multiple_of=1):
    """Largest divisor of n that is <= cap and a multiple of `multiple_of`.
    Never returns more than cap (falls back to 1)."""
    cap = max(1, min(n, cap))
    for t in range(cap, 0, -1):
        if n % t == 0 and t % multiple_of == 0:
            return t
    return 1


@functools.lru_cache(maxsize=None)
def _device_budget():
    """(per-step activation tile budget, vmem_limit cap) per TPU generation."""
    vmem = None
    try:
        info = pltpu.get_tpu_info()
        vmem = getattr(info, "vmem_capacity_bytes", None)
    except Exception:
        vmem = None
    if vmem is None:
        vmem = 64 << 20                      # unknown -> assume smallest (v7x)
    if vmem >= (100 << 20):                  # v5e / v6e: 128 MiB physical VMEM
        return 12 << 20, 96 << 20
    return 4 << 20, 48 << 20                 # v7x: 64 MiB physical, keep headroom


def _compiler_params(semantics, working_set_bytes, weight_bytes, limit_cap):
    limit = int(min(limit_cap,
                    max(2 * working_set_bytes + weight_bytes + (4 << 20),
                        16 << 20)))
    return pltpu.CompilerParams(dimension_semantics=semantics,
                                vmem_limit_bytes=limit)


# ------------------------------ JAX wrappers -------------------------------- #

def lateral_conv(x_nhwc, weight, bias, *, compute_dtype=None, out_dtype=None):
    """1x1 Conv2d on NHWC input (used only for the top pyramid level).
    weight: (Cout, Cin, 1, 1), bias: (Cout,). Returns NHWC (N, H, W, Cout)."""
    N, H, W, Cin = x_nhwc.shape
    Cout = weight.shape[0]
    out_dtype = out_dtype or x_nhwc.dtype
    cdt = compute_dtype or x_nhwc.dtype
    tile_budget, limit_cap = _device_budget()

    M = N * H * W
    x2 = x_nhwc.reshape(M, Cin)
    Mp = ((M + 7) // 8) * 8
    if Mp != M:                               # pad rows so tiles stay (8,·)-aligned
        x2 = jnp.pad(x2, ((0, Mp - M), (0, 0)))

    wm = jnp.transpose(weight[:, :, 0, 0], (1, 0)).astype(cdt)    # (Cin, Cout)
    b = bias.reshape(1, Cout).astype(jnp.float32)

    sz_x = x2.dtype.itemsize
    sz_o = jnp.dtype(out_dtype).itemsize
    row_bytes = sz_x * Cin + sz_o * Cout
    cap = max(8, tile_budget // max(1, row_bytes))
    cap = min(cap, max(8, Mp // 2))           # >= 2 blocks when possible (dual TC)
    tm = _largest_divisor(Mp, cap, multiple_of=8)
    grid = (Mp // tm,)
    ws = tm * row_bytes
    wb = wm.size * wm.dtype.itemsize + b.size * 4

    out = pl.pallas_call(
        functools.partial(_lateral_kernel, cdt=cdt),
        out_shape=jax.ShapeDtypeStruct((Mp, Cout), out_dtype),
        grid=grid,
        in_specs=[pl.BlockSpec((tm, Cin), lambda i: (i, 0)),
                  pl.BlockSpec((Cin, Cout), lambda i: (0, 0)),
                  pl.BlockSpec((1, Cout), lambda i: (0, 0))],
        out_specs=pl.BlockSpec((tm, Cout), lambda i: (i, 0)),
        compiler_params=_compiler_params(("parallel",), ws, wb, limit_cap),
    )(x2, wm, b)

    if Mp != M:
        out = out[:M]
    return out.reshape(N, H, W, Cout)


def deconv_lateral_fuse(cur_nhwc, wd, bd, x_fine_nhwc, wl, bl, *,
                        compute_dtype=None, out_dtype=None):
    """ConvTranspose2d(C, C, 2, stride=2)(cur) + Conv1x1(x_fine), fused.
    cur: (N, H, W, C), wd: (C, C, 2, 2) [torch ConvTranspose2d layout], bd: (C,),
    x_fine: (N, 2H, 2W, Cin), wl: (C, Cin, 1, 1), bl: (C,).
    Returns NHWC (N, 2H, 2W, C)."""
    N, H, W, C = cur_nhwc.shape
    Nf, Hf, Wf, Cin = x_fine_nhwc.shape
    # TODO(synk): odd-sized FPN levels (finer != exactly 2x) need output_padding handling.
    assert (Nf, Hf, Wf) == (N, 2 * H, 2 * W)
    out_dtype = out_dtype or x_fine_nhwc.dtype
    cdt = compute_dtype or x_fine_nhwc.dtype
    tile_budget, limit_cap = _device_budget()

    R = N * H
    # Free reshapes only (no HBM-materializing transpose).
    cur3 = cur_nhwc.reshape(R, W, C)                        # (R, W, C)
    x4 = x_fine_nhwc.reshape(R, 2, W, 2 * Cin)              # (R, kh, W, (kw,ci))

    # Deconv weight per kh with (kw, co) packed on the output/lane axis.
    wd2 = jnp.transpose(wd, (2, 0, 3, 1)).reshape(2, C, 2 * C).astype(cdt)  # [kh, ci, kw*C+co]
    wlm = jnp.transpose(wl[:, :, 0, 0], (1, 0)).astype(cdt)                 # (Cin, C)
    b2 = jnp.tile((bd + bl).astype(jnp.float32), 2).reshape(1, 2 * C)       # (1, 2C), cols (kw, c)
    # NOTE: for unmasked lane-dense stores 2*C should be a multiple of 128
    # (true for real FPN C=256); smaller C is still correct, just masked.

    sz_c = cur3.dtype.itemsize
    sz_x = x4.dtype.itemsize
    sz_o = jnp.dtype(out_dtype).itemsize
    per_row = W * C * sz_c + 4 * W * Cin * sz_x + 4 * W * C * sz_o
    cap_rows = max(1, tile_budget // max(1, per_row))
    if R >= 2:
        cap_rows = min(cap_rows, max(1, R // 2))   # >= 2 parallel blocks (v7x dual TC)
    tr = _largest_divisor(R, cap_rows)
    grid = (R // tr,)
    ws = tr * per_row
    wb = (wd2.size * wd2.dtype.itemsize + wlm.size * wlm.dtype.itemsize
          + b2.size * 4)

    out4 = pl.pallas_call(
        functools.partial(_deconv_lateral_kernel, cdt=cdt),
        out_shape=jax.ShapeDtypeStruct((R, 2, W, 2 * C), out_dtype),
        grid=grid,
        in_specs=[
            pl.BlockSpec((tr, W, C), lambda r: (r, 0, 0)),          # coarse rows
            pl.BlockSpec((tr, 2, W, 2 * Cin), lambda r: (r, 0, 0, 0)),  # fine input
            pl.BlockSpec((2, C, 2 * C), lambda r: (0, 0, 0)),       # deconv W (resident)
            pl.BlockSpec((Cin, C), lambda r: (0, 0)),               # lateral W (resident)
            pl.BlockSpec((1, 2 * C), lambda r: (0, 0)),             # combined bias
        ],
        out_specs=pl.BlockSpec((tr, 2, W, 2 * C), lambda r: (r, 0, 0, 0)),
        compiler_params=_compiler_params(("parallel",), ws, wb, limit_cap),
    )(cur3, x4, wd2, wlm, b2)

    # (R, 2, W, 2C) is bit-identical to (N, 2H, 2W, C) in memory -> free reshape.
    return out4.reshape(N, 2 * H, 2 * W, C)


def upsample_fuse_nhwc(xs_nhwc, conv_ws, conv_bs, deconv_ws, deconv_bs, *,
                       compute_dtype=jnp.bfloat16):
    """Forward pass on NHWC pyramid inputs; returns NHWC level-0 output."""
    L = len(xs_nhwc)
    final_dtype = xs_nhwc[0].dtype
    cdt = compute_dtype or final_dtype
    inter_dtype = cdt                       # intermediates live in compute dtype

    cur = lateral_conv(xs_nhwc[-1], conv_ws[-1], conv_bs[-1],
                       compute_dtype=cdt,
                       out_dtype=(inter_dtype if L > 1 else final_dtype))
    for i in range(L - 2, -1, -1):
        cur = deconv_lateral_fuse(cur, deconv_ws[i], deconv_bs[i],
                                  xs_nhwc[i], conv_ws[i], conv_bs[i],
                                  compute_dtype=cdt,
                                  out_dtype=(final_dtype if i == 0 else inter_dtype))
    return cur


def upsample_fuse(xs, conv_ws, conv_bs, deconv_ws, deconv_bs, *,
                  compute_dtype=jnp.bfloat16):
    """NCHW API matching the PyTorch module. xs: list of NCHW tensors
    (level 0 = highest resolution). Returns NCHW tensor at level-0 resolution."""
    # TODO(synk): NCHW<->NHWC boundary transposes kept only to match the torch
    # API; use upsample_fuse_nhwc directly to avoid the extra HBM passes.
    xs_nhwc = [jnp.transpose(x, (0, 2, 3, 1)) for x in xs]
    out = upsample_fuse_nhwc(xs_nhwc, conv_ws, conv_bs, deconv_ws, deconv_bs,
                             compute_dtype=compute_dtype)
    return jnp.transpose(out, (0, 3, 1, 2))


# ------------------------------ pure-JAX reference --------------------------- #

def _ref_pw(x, w, b):
    return jnp.einsum('nchw,oc->nohw', x, w[:, :, 0, 0]) + b[None, :, None, None]


def _ref_deconv(x, w, b):
    # x: (N, C, H, W), w: (Cin, Cout, 2, 2) -> (N, Cout, 2H, 2W)
    y = jnp.einsum('nchw,codk->nohwdk', x, w)
    N, Co, H, W, _, _ = y.shape
    y = y.transpose(0, 1, 2, 4, 3, 5).reshape(N, Co, 2 * H, 2 * W)
    return y + b[None, :, None, None]


def _ref_forward(xs, conv_ws, conv_bs, deconv_ws, deconv_bs):
    L = len(xs)
    tmp = [_ref_pw(xs[i], conv_ws[i], conv_bs[i]) for i in range(L)]
    cur = tmp[-1]
    for i in range(L - 2, -1, -1):
        cur = _ref_deconv(cur, deconv_ws[i], deconv_bs[i]) + tmp[i]
    return cur


# ------------------------------------ main ----------------------------------- #

if __name__ == "__main__":
    key = jax.random.PRNGKey(0)

    # 3-level pyramid: level 0 is highest resolution.
    N = 2
    in_chs = [4, 8, 16]
    spatials = [16, 8, 4]
    C_OUT = 8
    L = len(in_chs)

    keys = jax.random.split(key, 3 * L + 1)
    xs, conv_ws, conv_bs = [], [], []
    for i in range(L):
        xs.append(jax.random.normal(keys[3 * i + 0],
                                    (N, in_chs[i], spatials[i], spatials[i]),
                                    dtype=jnp.float32))
        conv_ws.append(0.1 * jax.random.normal(keys[3 * i + 1],
                                               (C_OUT, in_chs[i], 1, 1),
                                               dtype=jnp.float32))
        conv_bs.append(0.1 * jax.random.normal(keys[3 * i + 2],
                                               (C_OUT,), dtype=jnp.float32))

    dkeys = jax.random.split(keys[-1], 2 * (L - 1))
    deconv_ws, deconv_bs = [], []
    for i in range(L - 1):
        deconv_ws.append(0.1 * jax.random.normal(dkeys[2 * i + 0],
                                                 (C_OUT, C_OUT, 2, 2),
                                                 dtype=jnp.float32))
        deconv_bs.append(0.1 * jax.random.normal(dkeys[2 * i + 1],
                                                 (C_OUT,), dtype=jnp.float32))

    ref = _ref_forward(xs, conv_ws, conv_bs, deconv_ws, deconv_bs)

    # 1) Exact-precision path (f32 matmuls): tight check of layout / indexing.
    out_f32 = upsample_fuse(xs, conv_ws, conv_bs, deconv_ws, deconv_bs,
                            compute_dtype=jnp.float32)
    out_f32 = jax.block_until_ready(out_f32)
    assert out_f32.shape == (N, C_OUT, spatials[0], spatials[0]), out_f32.shape
    err = float(jnp.max(jnp.abs(out_f32 - ref)))
    assert jnp.allclose(out_f32, ref, atol=2e-3, rtol=2e-3), err

    # 2) Default perf path: bf16 matmul operands / intermediates, f32 accumulate.
    out_bf = upsample_fuse(xs, conv_ws, conv_bs, deconv_ws, deconv_bs)
    out_bf = jax.block_until_ready(out_bf)
    err_bf = float(jnp.max(jnp.abs(out_bf - ref)))
    assert jnp.allclose(out_bf, ref, atol=3e-2, rtol=3e-2), err_bf

    print("KERNEL_OK")
</pallas_src>

<mosaic_0001>
module attributes {stable_mosaic.version = 11 : i64} {
  func.func @_lateral_kernel(%arg0: i32, %arg1: memref<16x16xf32, #tpu.memory_space<vmem>>, %arg2: memref<16x8xf32, #tpu.memory_space<vmem>>, %arg3: memref<1x8xf32, #tpu.memory_space<vmem>>, %arg4: memref<16x8xf32, #tpu.memory_space<vmem>>) attributes {dimension_semantics = [#tpu.dimension_semantics<parallel>], iteration_bounds = array<i64: 2>, scalar_prefetch = 0 : i64, scratch_operands = 0 : i64, tpu.core_type = #tpu.core_type<tc>, window_params = [{transform_indices = @transform_0, window_bounds = array<i64: 16, 16>}, {pipeline_mode = #tpu.pipeline_mode<synchronous>, transform_indices = @transform_1, window_bounds = array<i64: 16, 8>}, {pipeline_mode = #tpu.pipeline_mode<synchronous>, transform_indices = @transform_2, window_bounds = array<i64: 1, 8>}, {transform_indices = @transform_3, window_bounds = array<i64: 16, 8>}]} {
    %c0 = arith.constant 0 : index
    %c0_0 = arith.constant 0 : index
    %0 = vector.load %arg1[%c0, %c0_0] : memref<16x16xf32, #tpu.memory_space<vmem>>, vector<16x16xf32>
    %c0_1 = arith.constant 0 : index
    %c0_2 = arith.constant 0 : index
    %1 = vector.load %arg2[%c0_1, %c0_2] : memref<16x8xf32, #tpu.memory_space<vmem>>, vector<16x8xf32>
    %cst = arith.constant dense<0.000000e+00> : vector<16x8xf32>
    %2 = tpu.matmul %0, %1, %cst {dimension_numbers = #tpu.dot_dimension_numbers<[1], [0], [0], [1], [0, 0, 1, 1], [], []>} : vector<16x16xf32>, vector<16x8xf32>, vector<16x8xf32> -> vector<16x8xf32>
    %c0_3 = arith.constant 0 : index
    %c0_4 = arith.constant 0 : index
    %3 = vector.load %arg3[%c0_3, %c0_4] : memref<1x8xf32, #tpu.memory_space<vmem>>, vector<1x8xf32>
    %4 = vector.broadcast %3 : vector<1x8xf32> to vector<16x8xf32>
    %5 = arith.addf %2, %4 : vector<16x8xf32>
    %c0_5 = arith.constant 0 : index
    %c0_6 = arith.constant 0 : index
    %6 = vector.load %arg4[%c0_5, %c0_6] : memref<16x8xf32, #tpu.memory_space<vmem>>, vector<16x8xf32>
    tpu.vector_store %arg4[%c0_5, %c0_6], %5 {strides = array<i32>} : memref<16x8xf32, #tpu.memory_space<vmem>>, vector<16x8xf32>,
    return
  }
  func.func @transform_0(%arg0: i32) -> (i32, i32) {
    %c0_i32 = arith.constant 0 : i32
    %c0_i32_0 = arith.constant 0 : i32
    return %arg0, %c0_i32 : i32, i32
  }
  func.func @transform_1(%arg0: i32) -> (i32, i32) {
    %c0_i32 = arith.constant 0 : i32
    %c0_i32_0 = arith.constant 0 : i32
    %c0_i32_1 = arith.constant 0 : i32
    return %c0_i32, %c0_i32_0 : i32, i32
  }
  func.func @transform_2(%arg0: i32) -> (i32, i32) {
    %c0_i32 = arith.constant 0 : i32
    %c0_i32_0 = arith.constant 0 : i32
    %c0_i32_1 = arith.constant 0 : i32
    return %c0_i32, %c0_i32_0 : i32, i32
  }
  func.func @transform_3(%arg0: i32) -> (i32, i32) {
    %c0_i32 = arith.constant 0 : i32
    %c0_i32_0 = arith.constant 0 : i32
    return %arg0, %c0_i32 : i32, i32
  }
}

</mosaic_0001>

<bundles_post_ra>
// kernel: tpu_custom_call.1
= control target key start
LH: loop header
LB: loop body
LE: loop exit
PB: predicated region body
PF: predicated region fallthrough
CT: control target
= control target key end

     0   :  { %s391_s12 = smov 0   ;;  %s417_s0 = inlined_call_operand.vmem [shape: f32[32,16], index: 0, kind: input, shape index: {}]   ;;  %s418_s1 = inlined_call_operand.vmem [shape: f32[16,8], index: 1, kind: input, shape index: {}]   ;;  %s419_s2 = inlined_call_operand.vmem [shape: f32[1,8], index: 2, kind: input, shape index: {}]   ;;  %s420_s3 = inlined_call_operand.vmem [shape: f32[32,8], index: 3, kind: output, shape index: {}]  }
   0x1 LB: > { %s326_s13 = sadd.s32 4294967295, %s369_s12   ;;  %p330_p0 = scmp.ge.s32.totalorder %s369_s12, 1  ;;  %s369_s12 = sphi %s391_s12, %s13_s12  }
   0x2   : > { %p138_p1 = scmp.lt.s32.totalorder %s369_s12, 3 }
   0x4   : > { %p139_p2 = pnand %p330_p0, %p138_p1 }
   0x5   : > { %v176_v0 = vld [vmem:[%s418_s1] sm:$0xff] (!%p139_p2)  ;;  %v177_v1 = vld [vmem:[%s418_s1 + $0x8] sm:$0xff] (!%p139_p2)  ;;  %s331_s18 = sshll.u32 (!%p139_p2), %s326_s13, 1  ;;  %vm185_vm0 = vcmask (!%p139_p2), 130048   ;;  %vm267_vm1 = vcmask (!%p139_p2), 64512  }
   0x6   : > { %142 = sbr.rel (%p139_p2) target bundleno = 234 (0xea), region = 32  ;;  %v351_v2 = vpack.c.bf16 (!%p139_p2), %v177_v1, %v176_v0  ;;  %p163_p3 = scmp.lt.s32.totalorder (!%p139_p2), %s331_s18, 3  ;;  %v335_v5 = vld [vmem:[%s419_s2] ss:$0 sm:$0xff] (!%p139_p2) }
   0x8   : > { %352 = vmatprep.subr.bf16.mxu0 (!%p139_p2), %v351_v2 }
   0x9   : > { %354 = vmatpush3.bf16.msra.mxu0 (!%p139_p2), %v351_v2 }
   0xd   : > { %s422_s18 = smov (!%p163_p3, %s331_s18), 3 }
   0xe   : > { %s332_s19 = sshll.u32 %s422_s18, 3 }
   0xf   : > { %s166_s22 = scalar_lea.vmem %s417_s0, %s332_s19  ;;  %s172_s27 = scalar_lea.vmem %s420_s3, %s332_s19 }
  0x10   : > { %v174_v3 = vld [vmem:[%s166_s22] sm:$0xff]  ;;  %v175_v4 = vld [vmem:[%s166_s22 + $0x8] sm:$0xff] }
  0x11   : > { %348 = vmatprep.mubr.msk.f32.mxu0 %vm185_vm0, %v174_v3 }
  0x12   : > { %349 = vmatmul.mubr.msk.f32.vlgmr.msra.gmra.mrb[0].mxu0 %vm185_vm0, %v175_v4 }
  0xe5   : > { %v350_v6 = vpop.f32.mrb[0].mxu0 }
  0xe6   : > { %v258_v7 = vpop.f32.mrb[1].mxu0  ;;  %v264_v9 = vadd.f32 %v350_v6, %v335_v5 }
  0xe7   : > { %v259_v8 = vadd.f32 %v335_v5, %v258_v7 }
  0xe8   : > { %269 = vst.msk [vmem:[%s172_s27 + $0x8] sm:$0xff] %vm267_vm1, %v264_v9 }
  0xe9   : > { %268 = vst.msk [vmem:[%s172_s27] sm:$0xff] %vm267_vm1, %v259_v8 }
  0xea PF: > { %s13_s12 = sadd.s32 1, %s369_s12  }
  0xeb   : > { %p10_p4 = scmp.ge.s32.totalorder %s13_s12, 4  }
  0xed   :  { %12 = sbr.rel (!%p10_p4) target bundleno = 1 (0x1), region = 62 }

</bundles_post_ra>
